<compile_context>
chip_gen: v5e
topology: v5e:2x2
jax: 0.10.0
libtpu: 0.0.40
codegen_flags: <defaults>
</compile_context>

<pallas_src>
import functools

import jax
import jax.numpy as jnp
from jax.experimental import pallas as pl
from jax.experimental.pallas import tpu as pltpu

# ---- hyperparameters (Custom_FBD defaults) ----
TEMP = 0.5
ALPHA_FGD = 0.001
BETA_FGD = 0.0005
GAMMA_FGD = 0.001
LAMBDA_FGD = 5e-06  # relation-loss weight — not used by forward()


def _round_up(x, m):
    return ((x + m - 1) // m) * m


def _vmem_limit_bytes():
    """Per-generation VMEM limit: ~3/4 of physical capacity, capped at 96 MiB.
    (128 MiB on v5e/v6e -> 96 MiB limit; 64 MiB on v7x -> 48 MiB limit.)"""
    cap = 64 * 1024 * 1024  # conservative fallback (v7x-sized)
    try:
        cap = int(getattr(pltpu.get_tpu_info(), "vmem_capacity_bytes", cap))
    except Exception:
        pass
    return max(32 * 1024 * 1024, min((cap * 3) // 4, 96 * 1024 * 1024))


def _pick_tile_hw(n, cs, ct, hw, in_itemsize, has_align, budget_bytes):
    """Largest HW tile (multiple of 128) whose double-buffered streams + rough
    f32 working set stay under the streaming budget (which is derived from the
    generation's VMEM capacity)."""
    stream = in_itemsize * n * (cs + ct) + 4           # per-lane, per buffer
    temps = 4 * ct * 4 if has_align else 4 * n * ct * 3  # f32 temporaries (rough)
    per_lane = 2 * stream + temps + 64                  # dbl-buffered + temps + acc
    t = max(128, min(2048, (budget_bytes // per_lane) // 128 * 128))
    return min(t, _round_up(hw, 128))


# ---------------------------------------------------------------------------
# Fused kernel: (optional bf16 1x1 align on the MXU) + masked-MSE reductions.
#   grid = (P, K): p = megacore-parallel chunk of HW, k = accumulation steps.
#   inputs per step : [w (Ct,Cs), b (Ct,1)]?, s (N,Cs,T), t (N,Ct,T), mfg2 (1,T)
#   output (resident accumulator, one block per p):
#     sums (1, 3, T)  lane-dense per-lane partials of
#                     [Σ dp², Σ dp²·mfg2, Σ dS²]   (bg/sa derived in the wrapper)
# ---------------------------------------------------------------------------
def _fbd_loss_kernel(*refs, n_batch, c_teacher, hw_valid, has_align,
                     needs_valid, mm_dtype):
    if has_align:
        w_ref, b_ref, s_ref, t_ref, m_ref, sums_ref = refs
    else:
        s_ref, t_ref, m_ref, sums_ref = refs

    k = pl.program_id(1)

    @pl.when(k == 0)
    def _init():
        sums_ref[...] = jnp.zeros_like(sums_ref)

    tile = s_ref.shape[-1]
    inv_c = 1.0 / float(c_teacher)
    # Pre-summed mask row: mfg2[px] = sum_n Mask_fg[n, px]; Mask_bg sums are
    # N - mfg2 (masks are exactly {0,1} and complementary) -> derived in wrapper.
    mfg2 = m_ref[...]                                                # (1, T)

    if has_align:
        w = w_ref[...]                                               # (Ct, Cs) mm_dtype
        b = b_ref[...]                                               # (Ct, 1)  f32
        zeros = jnp.zeros((1, tile), jnp.float32)

        def body(n, carry):
            dp2_acc, ds2_acc = carry
            # fused 1x1 conv on the MXU (bf16 in, f32 accumulate)
            s_al = jnp.dot(w, s_ref[n].astype(mm_dtype),
                           preferred_element_type=jnp.float32) + b   # (Ct, T)
            t_n = t_ref[n].astype(jnp.float32)                       # (Ct, T)
            d = s_al - t_n
            dp2 = jnp.sum(d * d, axis=0, keepdims=True)              # (1, T)
            ss = jnp.sum(s_al * s_al, axis=0, keepdims=True)
            ts = jnp.sum(t_n * t_n, axis=0, keepdims=True)
            dS = (ss - ts) * inv_c                                   # (1, T)
            return dp2_acc + dp2, ds2_acc + dS * dS

        dp2_hw, dS2_hw = jax.lax.fori_loop(0, n_batch, body, (zeros, zeros),
                                           unroll=n_batch <= 4)
    else:
        # fully batched elementwise over the whole (N, C, T) block
        s = s_ref[...].astype(jnp.float32)
        t = t_ref[...].astype(jnp.float32)
        d = s - t
        dp2_hw = jnp.sum(jnp.sum(d * d, axis=1), axis=0, keepdims=True)   # (1, T)
        ss = jnp.sum(s * s, axis=1)                                        # (N, T)
        ts = jnp.sum(t * t, axis=1)
        dS = (ss - ts) * inv_c
        dS2_hw = jnp.sum(dS * dS, axis=0, keepdims=True)                   # (1, T)

    if needs_valid:
        # Zero out HW padding: with the align bias, dp2/dS2 are non-zero on the
        # zero-padded pixels, so mask them with a cheap in-kernel iota compare.
        start = (pl.program_id(0) * pl.num_programs(1) + k) * tile
        lane = jax.lax.broadcasted_iota(jnp.int32, (1, tile), 1)
        validf = ((start + lane) < hw_valid).astype(jnp.float32)
        dp2_hw = dp2_hw * validf
        dS2_hw = dS2_hw * validf

    # Lane-dense per-lane accumulators (cross-lane reduction happens once, in the
    # wrapper).  mfg2 is 0 on padded pixels, so row 1 is pad-neutral by itself.
    sums_ref[0, 0:1, :] += dp2_hw          # A = Σ dp²
    sums_ref[0, 1:2, :] += dp2_hw * mfg2   # B = Σ dp² · mfg2
    sums_ref[0, 2:3, :] += dS2_hw          # C = Σ dS²


# ---------------------------------------------------------------------------
# Mask construction (faithful to the original's (1, H, W) slicing quirk).
# Returns per-row foreground indicator (N, H); the mask is constant along W.
# ---------------------------------------------------------------------------
def _build_fg_rows(gt_bboxes, img_metas, N, H, W):
    a = jnp.arange(H)
    rows = []
    for i in range(N):
        boxes = jnp.asarray(gt_bboxes[i], jnp.float32)               # (nt_i, 4)
        img_h = float(img_metas[i]["img_shape"][0])
        img_w = float(img_metas[i]["img_shape"][1])
        wmin = jnp.floor(boxes[:, 0] / img_w * W).astype(jnp.int32)
        wmax = jnp.ceil(boxes[:, 2] / img_w * W).astype(jnp.int32)
        hmin = jnp.floor(boxes[:, 1] / img_h * H).astype(jnp.int32)
        # Original: Mask_fg[i] is (1, H, W); [hmin:hmax+1, wmin:wmax+1] hits dim0
        # (size 1) only when hmin <= 0 and dim1 (size H) on [wmin, wmax]; the W
        # axis is always fully covered -> hmax never matters.
        hit = ((hmin[:, None] <= 0)
               & (wmin[:, None] <= a[None, :])
               & (a[None, :] <= wmax[:, None]))
        rows.append(jnp.any(hit, axis=0))
    return jnp.stack(rows).astype(jnp.float32)                        # (N, H)


def _c_attention_jax(preds_S, preds_T, align_params):
    # TODO(synk): C_attention is computed by the original forward() but never
    # feeds the returned loss; kept out of the Pallas kernel and only computed
    # here (plain JAX) on demand.
    s = preds_S.astype(jnp.float32)
    t = preds_T.astype(jnp.float32)
    if align_params is not None:
        w, b = align_params
        Ct, Cs = w.shape[0], w.shape[1]
        s = (jnp.einsum("oc,nchw->nohw",
                        jnp.asarray(w, jnp.float32).reshape(Ct, Cs), s)
             + jnp.asarray(b, jnp.float32).reshape(1, Ct, 1, 1))
    C = s.shape[1]
    cm_s = jnp.mean(s * s, axis=(2, 3))
    cm_t = jnp.mean(t * t, axis=(2, 3))
    return C * jax.nn.softmax(cm_s / TEMP, axis=1), C * jax.nn.softmax(cm_t / TEMP, axis=1)


# ---------------------------------------------------------------------------
# Forward wrapper.
# ---------------------------------------------------------------------------
def custom_fbd_forward(preds_S, preds_T, gt_bboxes, img_metas, align_params=None,
                       *, tile_hw=None, align_matmul_dtype=jnp.bfloat16,
                       need_attention=False):
    N, Cs, H, W = preds_S.shape
    Nt, Ct, Ht, Wt = preds_T.shape
    assert (H, W) == (Ht, Wt) and N == Nt, "teacher/student spatial dims differ"
    has_align = align_params is not None
    if not has_align:
        assert Cs == Ct, "channels differ but no align conv given"
    HW = H * W

    # Per-pixel batch-sum of the fg mask (only quantity the loss ever needs).
    fg_rows = _build_fg_rows(gt_bboxes, img_metas, N, H, W)           # (N, H)
    mfg2 = jnp.broadcast_to(jnp.sum(fg_rows, axis=0)[:, None],
                            (H, W)).reshape(1, HW).astype(jnp.float32)

    # Features keep HW on the lane axis and are streamed in their native dtype
    # (no wrapper upcast -> no extra HBM pass, half the bytes for bf16 inputs).
    s_flat = preds_S.reshape(N, Cs, HW)
    t_flat = preds_T.reshape(N, Ct, HW)
    in_itemsize = max(jnp.dtype(preds_S.dtype).itemsize,
                      jnp.dtype(preds_T.dtype).itemsize)

    # ---- per-generation tiling over HW --------------------------------------
    vmem_limit = _vmem_limit_bytes()
    tile = tile_hw if tile_hw is not None else _pick_tile_hw(
        N, Cs, Ct, HW, in_itemsize, has_align, vmem_limit // 3)
    assert tile % 128 == 0 and tile > 0

    ntiles = -(-HW // tile)
    if ntiles >= 2:
        ntiles = _round_up(ntiles, 2)     # always even -> P=2 (v7x megacore)
        P = 2
    else:
        P = 1
    K = ntiles // P
    hwp = P * K * tile
    if hwp != HW:
        pad = hwp - HW                    # neutral: see needs_valid / mfg2==0 on pad
        s_flat = jnp.pad(s_flat, ((0, 0), (0, 0), (0, pad)))
        t_flat = jnp.pad(t_flat, ((0, 0), (0, 0), (0, pad)))
        mfg2 = jnp.pad(mfg2, ((0, 0), (0, pad)))
    # Without align, padded pixels give dp2 = dS2 = 0 exactly; with align the
    # bias makes them non-zero, so the kernel masks them.
    needs_valid = has_align and (hwp != HW)

    kernel = functools.partial(
        _fbd_loss_kernel, n_batch=N, c_teacher=Ct, hw_valid=HW,
        has_align=has_align, needs_valid=needs_valid, mm_dtype=align_matmul_dtype)

    in_specs = []
    args = []
    if has_align:
        w, b = align_params                               # (Ct,Cs,1,1), (Ct,)
        w2 = jnp.asarray(w).reshape(Ct, Cs).astype(align_matmul_dtype)
        b2 = jnp.asarray(b).reshape(Ct, 1).astype(jnp.float32)
        in_specs += [pl.BlockSpec((Ct, Cs), lambda p, k: (0, 0)),
                     pl.BlockSpec((Ct, 1), lambda p, k: (0, 0))]
        args += [w2, b2]
    in_specs += [
        pl.BlockSpec((N, Cs, tile), lambda p, k: (0, 0, p * K + k)),
        pl.BlockSpec((N, Ct, tile), lambda p, k: (0, 0, p * K + k)),
        pl.BlockSpec((1, tile), lambda p, k: (0, p * K + k)),
    ]
    args += [s_flat, t_flat, mfg2]

    out_shape = jax.ShapeDtypeStruct((P, 3, tile), jnp.float32)
    out_specs = pl.BlockSpec((1, 3, tile), lambda p, k: (p, 0, 0))

    mm_flops = 2 * N * Cs * Ct * hwp if has_align else 0
    ew_flops = 8 * N * Ct * hwp
    bytes_acc = (in_itemsize * N * (Cs + Ct) * hwp + 4 * hwp
                 + 4 * P * 3 * tile + (2 * Ct * (Cs + 1) if has_align else 0))

    sums_out = pl.pallas_call(
        kernel,
        out_shape=out_shape,
        grid=(P, K),
        in_specs=in_specs,
        out_specs=out_specs,
        compiler_params=pltpu.CompilerParams(
            # NOTE: "parallel" on axis 0 is the megacore split on multi-TC parts;
            # swap to pltpu.CORE_PARALLEL if profiling shows it is not sharded.
            dimension_semantics=("parallel", "arbitrary"),
            vmem_limit_bytes=int(vmem_limit)),
        cost_estimate=pl.CostEstimate(flops=int(mm_flops + ew_flops),
                                      transcendentals=0,
                                      bytes_accessed=int(bytes_acc)),
    )(*args)

    # ---- finish the (tiny) reductions and scale into the original's means ----
    sums = jnp.sum(sums_out, axis=(0, 2))                 # (3,) = [A, B, C]
    A, B, C = sums[0], sums[1], sums[2]
    fea_denom = float(N) ** 3 * float(Ct) * float(HW)     # mse mean (N,N,C,H,W), /N
    sa_denom = float(N) ** 3 * float(HW)                  # mse mean (N,N,1,H,W), /N
    fg_loss = B / fea_denom
    bg_loss = (float(N) * A - B) / fea_denom              # mbg2 = N - mfg2 ({0,1} masks)
    sa_loss = float(N) * C / sa_denom                     # sa_fg + sa_bg collapses to N·ΣdS²

    loss = ALPHA_FGD * fg_loss + BETA_FGD * bg_loss + GAMMA_FGD * sa_loss
    if need_attention:
        C_att_s, C_att_t = _c_attention_jax(preds_S, preds_T, align_params)
        return loss, (fg_loss, bg_loss, sa_loss, C_att_s, C_att_t)
    return loss, (fg_loss, bg_loss, sa_loss)


# ---------------------------------------------------------------------------
# Pure-JAX reference (explicit broadcast MSE, mirrors the PyTorch semantics).
# ---------------------------------------------------------------------------
def _reference_forward(preds_S, preds_T, gt_bboxes, img_metas, align_params=None):
    preds_S = preds_S.astype(jnp.float32)
    preds_T = preds_T.astype(jnp.float32)
    if align_params is not None:
        w, b = align_params
        Ct, Cs = w.shape[0], w.shape[1]
        preds_S = (jnp.einsum("oc,nchw->nohw",
                              jnp.asarray(w, jnp.float32).reshape(Ct, Cs), preds_S,
                              precision=jax.lax.Precision.HIGHEST)
                   + jnp.asarray(b, jnp.float32).reshape(1, Ct, 1, 1))
    N, C, H, W = preds_S.shape
    fg_rows = _build_fg_rows(gt_bboxes, img_metas, N, H, W)
    Mask_fg = jnp.broadcast_to(fg_rows[:, :, None], (N, H, W))
    Mask_bg = 1.0 - Mask_fg
    mfg = Mask_fg[:, None, None, :, :]                    # (N,1,1,H,W)
    mbg = Mask_bg[:, None, None, :, :]
    S = preds_S[None]                                     # (1,N,C,H,W)
    T = preds_T[None]
    fg_loss = jnp.mean((S * mfg - T * mfg) ** 2) / N
    bg_loss = jnp.mean((S * mbg - T * mbg) ** 2) / N
    S_s = jnp.mean(preds_S ** 2, axis=1, keepdims=True)[None]   # (1,N,1,H,W)
    S_t = jnp.mean(preds_T ** 2, axis=1, keepdims=True)[None]
    sa_loss = (jnp.mean((S_s * mfg - S_t * mfg) ** 2) / N
               + jnp.mean((S_s * mbg - S_t * mbg) ** 2) / N)
    return ALPHA_FGD * fg_loss + BETA_FGD * bg_loss + GAMMA_FGD * sa_loss


# ---------------------------------------------------------------------------
if __name__ == "__main__":
    key = jax.random.PRNGKey(0)
    N, Cs, Ct, H, W = 2, 16, 32, 32, 32
    k1, k2, k3, k4, k5 = jax.random.split(key, 5)

    preds_S = jax.random.normal(k1, (N, Cs, H, W), jnp.float32)
    preds_T = jax.random.normal(k2, (N, Ct, H, W), jnp.float32)
    align_w = jax.random.normal(k3, (Ct, Cs, 1, 1), jnp.float32) / jnp.sqrt(float(Cs))
    align_b = 0.1 * jax.random.normal(k4, (Ct,), jnp.float32)

    img_metas = [{"img_shape": (128, 128, 3)}, {"img_shape": (160, 160, 3)}]
    gt_bboxes = [  # ragged box counts supported
        jnp.array([[4.0, 2.0, 60.0, 50.0], [70.0, 30.0, 110.0, 90.0]], jnp.float32),
        jnp.array([[10.0, 5.0, 80.0, 40.0], [20.0, 64.0, 100.0, 120.0],
                   [3.0, 1.0, 40.0, 30.0]], jnp.float32),
    ]

    # 1) Align path (Cs != Ct): fused bf16 1x1 conv on the MXU; tile=384 forces
    #    HW padding (valid-mask path) and the P=2 even-tile-count rounding.
    loss1, (fg1, bg1, sa1) = custom_fbd_forward(
        preds_S, preds_T, gt_bboxes, img_metas,
        align_params=(align_w, align_b), tile_hw=384)
    jax.block_until_ready(loss1)
    ref1 = _reference_forward(preds_S, preds_T, gt_bboxes, img_metas,
                              align_params=(align_w, align_b))
    assert abs(float(loss1) - float(ref1)) <= 2e-2 * abs(float(ref1)) + 1e-9, \
        (float(loss1), float(ref1))

    # 2) No-align path (Cs == Ct), f32 streaming, exact tiling (no padding).
    preds_S2 = jax.random.normal(k5, (N, Ct, H, W), jnp.float32)
    loss2, _ = custom_fbd_forward(preds_S2, preds_T, gt_bboxes, img_metas,
                                  align_params=None, tile_hw=256)
    jax.block_until_ready(loss2)
    ref2 = _reference_forward(preds_S2, preds_T, gt_bboxes, img_metas,
                              align_params=None)
    assert abs(float(loss2) - float(ref2)) <= 1e-3 * abs(float(ref2)) + 1e-9, \
        (float(loss2), float(ref2))

    # 3) Native bf16 streaming (no wrapper upcast) with auto tile selection.
    loss3, _ = custom_fbd_forward(preds_S2.astype(jnp.bfloat16),
                                  preds_T.astype(jnp.bfloat16),
                                  gt_bboxes, img_metas, align_params=None)
    jax.block_until_ready(loss3)
    ref3 = _reference_forward(preds_S2.astype(jnp.bfloat16).astype(jnp.float32),
                              preds_T.astype(jnp.bfloat16).astype(jnp.float32),
                              gt_bboxes, img_metas, align_params=None)
    assert abs(float(loss3) - float(ref3)) <= 1e-3 * abs(float(ref3)) + 1e-9, \
        (float(loss3), float(ref3))

    print("KERNEL_OK")
</pallas_src>

<mosaic_0001>
module attributes {stable_mosaic.version = 11 : i64} {
  func.func @_fbd_loss_kernel(%arg0: i32, %arg1: i32, %arg2: memref<32x16xbf16, #tpu.memory_space<vmem>>, %arg3: memref<32x1xf32, #tpu.memory_space<vmem>>, %arg4: memref<2x16x384xf32, #tpu.memory_space<vmem>>, %arg5: memref<2x32x384xf32, #tpu.memory_space<vmem>>, %arg6: memref<1x384xf32, #tpu.memory_space<vmem>>, %arg7: memref<1x3x384xf32, #tpu.memory_space<vmem>>) attributes {dimension_semantics = [#tpu.dimension_semantics<parallel>, #tpu.dimension_semantics<arbitrary>], iteration_bounds = array<i64: 2, 2>, scalar_prefetch = 0 : i64, scratch_operands = 0 : i64, tpu.core_type = #tpu.core_type<tc>, window_params = [{pipeline_mode = #tpu.pipeline_mode<synchronous>, transform_indices = @transform_0, window_bounds = array<i64: 32, 16>}, {pipeline_mode = #tpu.pipeline_mode<synchronous>, transform_indices = @transform_1, window_bounds = array<i64: 32, 1>}, {transform_indices = @transform_2, window_bounds = array<i64: 2, 16, 384>}, {transform_indices = @transform_3, window_bounds = array<i64: 2, 32, 384>}, {transform_indices = @transform_4, window_bounds = array<i64: 1, 384>}, {transform_indices = @transform_5, window_bounds = array<i64: 1, 3, 384>}]} {
    %c0_i32 = arith.constant 0 : i32
    %0 = arith.cmpi eq, %arg1, %c0_i32 : i32
    %1 = arith.extui %0 : i1 to i32
    %c0_i32_0 = arith.constant 0 : i32
    %2 = arith.cmpi ne, %1, %c0_i32_0 : i32
    scf.if %2 {
      %cst_42 = arith.constant 0.000000e+00 : f32
      %90 = vector.broadcast %cst_42 : f32 to vector<1x3x384xf32>
      %c0_43 = arith.constant 0 : index
      %c0_44 = arith.constant 0 : index
      %c0_45 = arith.constant 0 : index
      %91 = vector.load %arg7[%c0_43, %c0_44, %c0_45] : memref<1x3x384xf32, #tpu.memory_space<vmem>>, vector<1x3x384xf32>
      tpu.vector_store %arg7[%c0_43, %c0_44, %c0_45], %90 {strides = array<i32>} : memref<1x3x384xf32, #tpu.memory_space<vmem>>, vector<1x3x384xf32>,
    } else {
    }
    %c0 = arith.constant 0 : index
    %c0_1 = arith.constant 0 : index
    %3 = vector.load %arg6[%c0, %c0_1] : memref<1x384xf32, #tpu.memory_space<vmem>>, vector<1x384xf32>
    %c0_2 = arith.constant 0 : index
    %c0_3 = arith.constant 0 : index
    %4 = vector.load %arg2[%c0_2, %c0_3] : memref<32x16xbf16, #tpu.memory_space<vmem>>, vector<32x16xbf16>
    %c0_4 = arith.constant 0 : index
    %c0_5 = arith.constant 0 : index
    %5 = vector.load %arg3[%c0_4, %c0_5] : memref<32x1xf32, #tpu.memory_space<vmem>>, vector<32x1xf32>
    %cst = arith.constant 0.000000e+00 : f32
    %6 = vector.broadcast %cst : f32 to vector<1x384xf32>
    %c0_i32_6 = arith.constant 0 : i32
    %7 = arith.index_cast %c0_i32_6 : i32 to index
    %c0_7 = arith.constant 0 : index
    %c0_8 = arith.constant 0 : index
    %8 = vector.load %arg4[%7, %c0_7, %c0_8] : memref<2x16x384xf32, #tpu.memory_space<vmem>>, vector<1x16x384xf32>
    %9 = vector.shape_cast %8 : vector<1x16x384xf32> to vector<16x384xf32>
    %10 = arith.truncf %9 : vector<16x384xf32> to vector<16x384xbf16>
    %cst_9 = arith.constant dense<0.000000e+00> : vector<32x384xf32>
    %11 = tpu.matmul %4, %10, %cst_9 {dimension_numbers = #tpu.dot_dimension_numbers<[1], [0], [0], [1], [0, 0, 1, 1], [], []>} : vector<32x16xbf16>, vector<16x384xbf16>, vector<32x384xf32> -> vector<32x384xf32>
    %12 = vector.broadcast %5 : vector<32x1xf32> to vector<32x384xf32>
    %13 = arith.addf %11, %12 : vector<32x384xf32>
    %14 = arith.index_cast %c0_i32_6 : i32 to index
    %c0_10 = arith.constant 0 : index
    %c0_11 = arith.constant 0 : index
    %15 = vector.load %arg5[%14, %c0_10, %c0_11] : memref<2x32x384xf32, #tpu.memory_space<vmem>>, vector<1x32x384xf32>
    %16 = vector.shape_cast %15 : vector<1x32x384xf32> to vector<32x384xf32>
    %17 = arith.subf %13, %16 : vector<32x384xf32>
    %18 = arith.mulf %17, %17 : vector<32x384xf32>
    %cst_12 = arith.constant dense<0.000000e+00> : vector<384xf32>
    %19 = vector.multi_reduction <add>, %18, %cst_12 [0] : vector<32x384xf32> to vector<384xf32>
    %20 = vector.shape_cast %19 : vector<384xf32> to vector<1x384xf32>
    %21 = arith.mulf %13, %13 : vector<32x384xf32>
    %cst_13 = arith.constant dense<0.000000e+00> : vector<384xf32>
    %22 = vector.multi_reduction <add>, %21, %cst_13 [0] : vector<32x384xf32> to vector<384xf32>
    %23 = vector.shape_cast %22 : vector<384xf32> to vector<1x384xf32>
    %24 = arith.mulf %16, %16 : vector<32x384xf32>
    %cst_14 = arith.constant dense<0.000000e+00> : vector<384xf32>
    %25 = vector.multi_reduction <add>, %24, %cst_14 [0] : vector<32x384xf32> to vector<384xf32>
    %26 = vector.shape_cast %25 : vector<384xf32> to vector<1x384xf32>
    %27 = arith.subf %23, %26 : vector<1x384xf32>
    %cst_15 = arith.constant 3.125000e-02 : f32
    %28 = vector.broadcast %cst_15 : f32 to vector<1x384xf32>
    %29 = arith.mulf %27, %28 : vector<1x384xf32>
    %30 = arith.addf %6, %20 : vector<1x384xf32>
    %31 = arith.mulf %29, %29 : vector<1x384xf32>
    %32 = arith.addf %6, %31 : vector<1x384xf32>
    %c1_i32 = arith.constant 1 : i32
    %33 = arith.index_cast %c1_i32 : i32 to index
    %c0_16 = arith.constant 0 : index
    %c0_17 = arith.constant 0 : index
    %34 = vector.load %arg4[%33, %c0_16, %c0_17] : memref<2x16x384xf32, #tpu.memory_space<vmem>>, vector<1x16x384xf32>
    %35 = vector.shape_cast %34 : vector<1x16x384xf32> to vector<16x384xf32>
    %36 = arith.truncf %35 : vector<16x384xf32> to vector<16x384xbf16>
    %cst_18 = arith.constant dense<0.000000e+00> : vector<32x384xf32>
    %37 = tpu.matmul %4, %36, %cst_18 {dimension_numbers = #tpu.dot_dimension_numbers<[1], [0], [0], [1], [0, 0, 1, 1], [], []>} : vector<32x16xbf16>, vector<16x384xbf16>, vector<32x384xf32> -> vector<32x384xf32>
    %38 = vector.broadcast %5 : vector<32x1xf32> to vector<32x384xf32>
    %39 = arith.addf %37, %38 : vector<32x384xf32>
    %40 = arith.index_cast %c1_i32 : i32 to index
    %c0_19 = arith.constant 0 : index
    %c0_20 = arith.constant 0 : index
    %41 = vector.load %arg5[%40, %c0_19, %c0_20] : memref<2x32x384xf32, #tpu.memory_space<vmem>>, vector<1x32x384xf32>
    %42 = vector.shape_cast %41 : vector<1x32x384xf32> to vector<32x384xf32>
    %43 = arith.subf %39, %42 : vector<32x384xf32>
    %44 = arith.mulf %43, %43 : vector<32x384xf32>
    %cst_21 = arith.constant dense<0.000000e+00> : vector<384xf32>
    %45 = vector.multi_reduction <add>, %44, %cst_21 [0] : vector<32x384xf32> to vector<384xf32>
    %46 = vector.shape_cast %45 : vector<384xf32> to vector<1x384xf32>
    %47 = arith.mulf %39, %39 : vector<32x384xf32>
    %cst_22 = arith.constant dense<0.000000e+00> : vector<384xf32>
    %48 = vector.multi_reduction <add>, %47, %cst_22 [0] : vector<32x384xf32> to vector<384xf32>
    %49 = vector.shape_cast %48 : vector<384xf32> to vector<1x384xf32>
    %50 = arith.mulf %42, %42 : vector<32x384xf32>
    %cst_23 = arith.constant dense<0.000000e+00> : vector<384xf32>
    %51 = vector.multi_reduction <add>, %50, %cst_23 [0] : vector<32x384xf32> to vector<384xf32>
    %52 = vector.shape_cast %51 : vector<384xf32> to vector<1x384xf32>
    %53 = arith.subf %49, %52 : vector<1x384xf32>
    %cst_24 = arith.constant 3.125000e-02 : f32
    %54 = vector.broadcast %cst_24 : f32 to vector<1x384xf32>
    %55 = arith.mulf %53, %54 : vector<1x384xf32>
    %56 = arith.addf %30, %46 : vector<1x384xf32>
    %57 = arith.mulf %55, %55 : vector<1x384xf32>
    %58 = arith.addf %32, %57 : vector<1x384xf32>
    %c2_i32 = arith.constant 2 : i32
    %c2_i32_25 = arith.constant 2 : i32
    %59 = arith.muli %arg0, %c2_i32_25 : i32
    %60 = arith.addi %59, %arg1 : i32
    %c384_i32 = arith.constant 384 : i32
    %61 = arith.muli %60, %c384_i32 : i32
    %62 = tpu.iota {dimensions = array<i32: 1>} : vector<1x384xi32>
    %63 = vector.broadcast %61 : i32 to vector<1x384xi32>
    %64 = arith.addi %63, %62 : vector<1x384xi32>
    %c1024_i32 = arith.constant 1024 : i32
    %65 = vector.broadcast %c1024_i32 : i32 to vector<1x384xi32>
    %66 = arith.cmpi slt, %64, %65 : vector<1x384xi32>
    %67 = arith.extui %66 : vector<1x384xi1> to vector<1x384xi32>
    %68 = arith.sitofp %67 : vector<1x384xi32> to vector<1x384xf32>
    %69 = arith.mulf %56, %68 : vector<1x384xf32>
    %70 = arith.mulf %58, %68 : vector<1x384xf32>
    %c0_26 = arith.constant 0 : index
    %c0_27 = arith.constant 0 : index
    %c0_28 = arith.constant 0 : index
    %71 = vector.load %arg7[%c0_26, %c0_27, %c0_28] : memref<1x3x384xf32, #tpu.memory_space<vmem>>, vector<1x1x384xf32>
    %72 = vector.shape_cast %71 : vector<1x1x384xf32> to vector<1x384xf32>
    %73 = arith.addf %72, %69 : vector<1x384xf32>
    %c0_29 = arith.constant 0 : index
    %c0_30 = arith.constant 0 : index
    %c0_31 = arith.constant 0 : index
    %74 = vector.load %arg7[%c0_29, %c0_30, %c0_31] : memref<1x3x384xf32, #tpu.memory_space<vmem>>, vector<1x1x384xf32>
    %75 = vector.shape_cast %74 : vector<1x1x384xf32> to vector<1x384xf32>
    %76 = vector.shape_cast %73 : vector<1x384xf32> to vector<1x1x384xf32>
    tpu.vector_store %arg7[%c0_29, %c0_30, %c0_31], %76 {strides = array<i32>} : memref<1x3x384xf32, #tpu.memory_space<vmem>>, vector<1x1x384xf32>,
    %c0_32 = arith.constant 0 : index
    %c1 = arith.constant 1 : index
    %c0_33 = arith.constant 0 : index
    %77 = vector.load %arg7[%c0_32, %c1, %c0_33] : memref<1x3x384xf32, #tpu.memory_space<vmem>>, vector<1x1x384xf32>
    %78 = vector.shape_cast %77 : vector<1x1x384xf32> to vector<1x384xf32>
    %79 = arith.mulf %69, %3 : vector<1x384xf32>
    %80 = arith.addf %78, %79 : vector<1x384xf32>
    %c0_34 = arith.constant 0 : index
    %c1_35 = arith.constant 1 : index
    %c0_36 = arith.constant 0 : index
    %81 = vector.load %arg7[%c0_34, %c1_35, %c0_36] : memref<1x3x384xf32, #tpu.memory_space<vmem>>, vector<1x1x384xf32>
    %82 = vector.shape_cast %81 : vector<1x1x384xf32> to vector<1x384xf32>
    %83 = vector.shape_cast %80 : vector<1x384xf32> to vector<1x1x384xf32>
    tpu.vector_store %arg7[%c0_34, %c1_35, %c0_36], %83 {strides = array<i32>} : memref<1x3x384xf32, #tpu.memory_space<vmem>>, vector<1x1x384xf32>,
    %c0_37 = arith.constant 0 : index
    %c2 = arith.constant 2 : index
    %c0_38 = arith.constant 0 : index
    %84 = vector.load %arg7[%c0_37, %c2, %c0_38] : memref<1x3x384xf32, #tpu.memory_space<vmem>>, vector<1x1x384xf32>
    %85 = vector.shape_cast %84 : vector<1x1x384xf32> to vector<1x384xf32>
    %86 = arith.addf %85, %70 : vector<1x384xf32>
    %c0_39 = arith.constant 0 : index
    %c2_40 = arith.constant 2 : index
    %c0_41 = arith.constant 0 : index
    %87 = vector.load %arg7[%c0_39, %c2_40, %c0_41] : memref<1x3x384xf32, #tpu.memory_space<vmem>>, vector<1x1x384xf32>
    %88 = vector.shape_cast %87 : vector<1x1x384xf32> to vector<1x384xf32>
    %89 = vector.shape_cast %86 : vector<1x384xf32> to vector<1x1x384xf32>
    tpu.vector_store %arg7[%c0_39, %c2_40, %c0_41], %89 {strides = array<i32>} : memref<1x3x384xf32, #tpu.memory_space<vmem>>, vector<1x1x384xf32>,
    return
  }
  func.func @transform_0(%arg0: i32, %arg1: i32) -> (i32, i32) {
    %c0_i32 = arith.constant 0 : i32
    %c0_i32_0 = arith.constant 0 : i32
    %c0_i32_1 = arith.constant 0 : i32
    return %c0_i32, %c0_i32_0 : i32, i32
  }
  func.func @transform_1(%arg0: i32, %arg1: i32) -> (i32, i32) {
    %c0_i32 = arith.constant 0 : i32
    %c0_i32_0 = arith.constant 0 : i32
    %c0_i32_1 = arith.constant 0 : i32
    return %c0_i32, %c0_i32_0 : i32, i32
  }
  func.func @transform_2(%arg0: i32, %arg1: i32) -> (i32, i32, i32) {
    %c2_i32 = arith.constant 2 : i32
    %0 = arith.muli %arg0, %c2_i32 : i32
    %1 = arith.addi %0, %arg1 : i32
    %c0_i32 = arith.constant 0 : i32
    %c0_i32_0 = arith.constant 0 : i32
    %c0_i32_1 = arith.constant 0 : i32
    return %c0_i32, %c0_i32_0, %1 : i32, i32, i32
  }
  func.func @transform_3(%arg0: i32, %arg1: i32) -> (i32, i32, i32) {
    %c2_i32 = arith.constant 2 : i32
    %0 = arith.muli %arg0, %c2_i32 : i32
    %1 = arith.addi %0, %arg1 : i32
    %c0_i32 = arith.constant 0 : i32
    %c0_i32_0 = arith.constant 0 : i32
    %c0_i32_1 = arith.constant 0 : i32
    return %c0_i32, %c0_i32_0, %1 : i32, i32, i32
  }
  func.func @transform_4(%arg0: i32, %arg1: i32) -> (i32, i32) {
    %c2_i32 = arith.constant 2 : i32
    %0 = arith.muli %arg0, %c2_i32 : i32
    %1 = arith.addi %0, %arg1 : i32
    %c0_i32 = arith.constant 0 : i32
    %c0_i32_0 = arith.constant 0 : i32
    return %c0_i32, %1 : i32, i32
  }
  func.func @transform_5(%arg0: i32, %arg1: i32) -> (i32, i32, i32) {
    %c0_i32 = arith.constant 0 : i32
    %c0_i32_0 = arith.constant 0 : i32
    %c0_i32_1 = arith.constant 0 : i32
    return %arg0, %c0_i32, %c0_i32_0 : i32, i32, i32
  }
}

</mosaic_0001>

<bundles_post_ra>
// kernel: tpu_custom_call.1
= control target key start
LH: loop header
LB: loop body
LE: loop exit
PB: predicated region body
PF: predicated region fallthrough
CT: control target
= control target key end

     0   :  { %s1740_s0 = inlined_call_operand.vmem [shape: bf16[32,16], index: 0, kind: input, shape index: {}]   ;;  %s1741_s1 = inlined_call_operand.vmem [shape: f32[32,1], index: 1, kind: input, shape index: {}]   ;;  %s1742_s2 = inlined_call_operand.hbm [shape: f32[2,16,1536], index: 2, kind: input, shape index: {}]   ;;  %s1743_s3 = inlined_call_operand.hbm [shape: f32[2,32,1536], index: 3, kind: input, shape index: {}]   ;;  %s1744_s4 = inlined_call_operand.vmem [shape: f32[1,1536], index: 4, kind: input, shape index: {}]   ;;  %s1745_s5 = inlined_call_operand.vmem [shape: f32[2,3,384], index: 5, kind: output, shape index: {}]  }
   0x1   :  { %1749 = sst [smem:[#allocation11_spill]] %s1742_s2 }
   0x2   :  { %10 = vsyncpa [#allocation3], 0 }
   0x3   :  { %12 = vsyncpa [#allocation3 + $0x1], 0 }
   0x4   :  { %13 = vsyncpa [#allocation5], 0 }
   0x5   :  { %15 = vsyncpa [#allocation5 + $0x1], 0  ;;  %s1371_s18 = smov 0   ;;  %s1373_s19 = smov 0  }
   0x6   :  { %s1375_s20 = smov 0   ;;  %s1377_s21 = smov 0  }
   0x7   :  { %s1379_s22 = smov 0   ;;  %s1381_s23 = smov 0  }
   0x8   :  { %s1383_s24 = smov 0   ;;  %s1385_s25 = smov 0  }
   0x9 LB: > { %1750 = sst [smem:[#allocation8_spill]] %s1329_s24  ;;  %s1042_s26 = sadd.s32 4294967295, %s1333_s25   ;;  %s1333_s25 = sphi %s1385_s25, %s21_s25   ;;  %s1329_s24 = sphi %s1383_s24, %s1760_s24   ;;  %s1325_s23 = sphi %s1381_s23, %s1765_s23   ;;  %s1321_s22 = sphi %s1379_s22, %s1758_s22   ;;  %s1317_s21 = sphi %s1377_s21, %s1764_s21   ;;  %s1313_s20 = sphi %s1375_s20, %s1763_s20   ;;  %s1309_s19 = sphi %s1373_s19, %s1762_s19   ;;  %s1305_s18 = sphi %s1371_s18, %s1761_s18  }
   0xa   : > { %s30_s27 = sadd.s32 1, %s1325_s23  ;;  %s33_s28 = sadd.s32 1, %s1329_s24 }
   0xb   : > { %p31_p0 = scmp.ge.s32.totalorder %s30_s27, 2  ;;  %s1044_s29 = sshll.u32 %s1329_s24, 1 }
   0xc   : > { %s86_s30 = sadd.s32 1, %s1313_s20  ;;  %s1418_s6 = sadd.s32 %s1325_s23, %s1044_s29 }
   0xd   : > { %s1767_s27 = smov (%p31_p0, %s30_s27), 0  ;;  %s1769_s28 = smov (!%p31_p0, %s33_s28), %s1329_s24 }
   0xe   : > { %1751 = sst [smem:[#allocation9_spill]] %s1767_s27  ;;  %p93_p1 = scmp.ne.s32.totalorder %s1313_s20, %s1309_s19 }
   0xf   : > { %p35_p2 = scmp.ge.s32.totalorder %s1769_s28, 2  ;;  %p94_p3 = scmp.eq.s32.totalorder %s1333_s25, 0 }
  0x10   : > { %p99_p4 = scmp.ne.s32.totalorder %s1309_s19, %s1305_s18  ;;  %p100_p5 = scmp.eq.s32.totalorder %s1042_s26, 0 }
  0x11   : > { %s1771_s28 = smov (%p35_p2, %s1769_s28), 0  ;;  %p95_p6 = por %p94_p3, %p93_p1 }
  0x12   : > { %1752 = sst [smem:[#allocation10_spill]] %s1771_s28  ;;  %p1426_p7 = por %p100_p5, %p99_p4 }
  0x13   : > { %s1045_s8 = sshll.u32 %s1771_s28, 1  ;;  %p1130_p8 = scmp.lt.s32.totalorder %s1333_s25, 4 }
  0x14   : > { %s82_s9 = sadd.s32 %s1045_s8, %s1767_s27  ;;  %s1435_s11 = sand.u32 1, %s1313_s20  }
  0x15   : > { %s83_s10 = ssub.s32 %s1418_s6, %s82_s9  ;;  %s1114_s12 = smul.u32 96, %s1435_s11 }
  0x16   : > { %p84_p9 = scmp.eq.s32.totalorder %s83_s10, 0  ;;  %p1438_p10 = pnand %p1130_p8, %p95_p6 }
  0x17   : > { %s1108_s15 = smul.u32 24, %s1418_s6  ;;  %s219_s16 = scalar_lea.vmem [#allocation2], %s1114_s12 }
  0x18   : > { %s1443_s14 = scalar_select %p84_p9, %s1313_s20, %s86_s30  }
  0x19   : > { %s229_s17 = sshll.u32 %s219_s16, 4  ;;  %s1755_s2 = sld [smem:[#allocation11_spill]]  ;;  %s230_s17 = int_to_ptr.vmem [resolvable:$true] %s229_s17 }
  0x1a   : > { %p1056_p11 = scmp.ge.s32.totalorder %s1333_s25, 1  ;;  %s216_s9 = scalar_lea.sflag [#allocation3], %s1435_s11 }
  0x1b   : > { %s1335_s10 = smov 1536   ;;  %s1336_s28 = smov 384  }
  0x1c   : > { %s1337_s27 = smov 24   ;;  %p273_p12 = scmp.lt.s32.totalorder %s1333_s25, 5 }
  0x1d   : > { %s1115_s30 = smul.u32 192, %s1435_s11  ;;  %s250_s16 = scalar_lea.hbm %s1743_s3, %s1108_s15 }
  0x1e   : > { %p274_p13 = pnand %p1056_p11, %p273_p12  ;;  %s251_s18 = sshll.u32 %s250_s16, 4  ;;  %s252_s18 = int_to_ptr.hbm [resolvable:$true] %s251_s18 }
  0x1f   : > { %s226_s29 = scalar_lea.hbm %s1755_s2, %s1108_s15  ;;  %s243_s26 = scalar_lea.vmem [#allocation4], %s1115_s30 }
  0x20   : > { %s227_s8 = sshll.u32 %s226_s29, 4  ;;  %s253_s29 = sshll.u32 %s243_s26, 4  ;;  %s228_s8 = int_to_ptr.hbm [resolvable:$true] %s227_s8  ;;  %s254_s29 = int_to_ptr.vmem [resolvable:$true] %s253_s29 }
  0x21   : > { %1126 = dma.hbm_to_vmem [thread:$0]  (!%p1438_p10), %s228_s8, 1536, %s230_s17, %s216_s9, %s1335_s10, %s1336_s28, %s1337_s27  }
  0x22   : > { %s240_s2 = scalar_lea.sflag [#allocation5], %s1435_s11  ;;  %277 = sbr.rel (%p274_p13) target bundleno = 285 (0x11d), region = 40 }
  0x23   : > { %1129 = dma.hbm_to_vmem [thread:$0]  (!%p1438_p10), %s252_s18, 3072, %s254_s29, %s240_s2, %s1335_s10, %s1336_s28, %s1337_s27  }
  0x24   : > { %s279_s24 = sand.u32 (!%p274_p13), 1, %s1309_s19  }
  0x25   : > { %s1116_s17 = smul.u32 (!%p274_p13), 96, %s279_s24  ;;  %s280_s8 = scalar_lea.sflag (!%p274_p13), [#allocation3], %s279_s24 }
  0x27   : > { %s1462_s9 = scalar_lea.vmem [#allocation2], %s1116_s17 }
  0x28   : > { %1296 = dma.done.wait (%p1426_p7), %s280_s8, 1536  }
  0x29   : > { %1298 = vsyncadd (%p1426_p7), %s280_s8, 4294965760  ;;  %s1117_s15 = smul.u32 192, %s279_s24  ;;  %s290_s30 = scalar_lea.sflag [#allocation5], %s279_s24 }
  0x2b   : > { %s1468_s6 = scalar_lea.vmem [#allocation4], %s1117_s15 }
  0x2c   : > { %1300 = dma.done.wait (%p1426_p7), %s290_s30, 3072  }
  0x2d   : > { %1302 = vsyncadd (%p1426_p7), %s290_s30, 4294964224  ;;  %s1057_s2 = sshll.u32 %s1321_s22, 1  ;;  %p347_p0 = scmp.lt.s32.totalorder %s1321_s22, 1 }
  0x2e   : > { %s1477_s27 = sadd.s32 %s1317_s21, %s1057_s2  ;;  %p1059_p2 = scmp.ne.s32.totalorder %s1317_s21, 0 }
  0x2f   : > { %s340_s28 = smul.u32 3, %s1477_s27  ;;  %s1773_s22 = smov (!%p347_p0, %s1321_s22), 1 }
  0x30   : > { %s1118_s24 = smul.u32 12, %s1773_s22 }
  0x31   : > { %p341_p1 = scmp.lt.s32.totalorder %s340_s28, 11  ;;  %356 = sbr.rel (%p1059_p2) target bundleno = 57 (0x39), region = 52 }
  0x32   : > { %s1486_s7 = scalar_lea.vmem %s1745_s5, %s1118_s24 }
  0x33   : > { %s1775_s28 = smov (!%p341_p1, %s340_s28), 11 }
  0x34   : > { %s343_s16 = scalar_lea.vmem %s1744_s4, %s1775_s28 }
  0x36   : > { %v1338_v0 = vmov 0.0  }
  0x37   : > { %357 = vst [vmem:[%s1486_s7] sm:$0x77] %v1338_v0 }
  0x38   : > { %358 = vst [vmem:[%s1486_s7 + $0x8] sm:$0x7] %v1338_v0 }
  0x39 PF: > { %v368_v1 = vld [vmem:[%s1462_s9] sm:$0xff]  ;;  %v371_v2 = vld [vmem:[%s1462_s9 + $0x18] sm:$0xff]  ;;  %v369_v3 = vld [vmem:[%s1462_s9 + $0x8] sm:$0xff]  ;;  %v1339_v8 = vmov 0   ;;  %vm407_vm0 = vcmask 130048   ;;  %s853_s11 = smul.u32 384, %s1477_s27 }
  0x3a   : > { %v374_v4 = vpack.c.bf16 %v371_v2, %v368_v1  ;;  %v372_v5 = vld [vmem:[%s1462_s9 + $0x20] sm:$0xff]  ;;  %v1111_v7 = vld [vmem:[%s1740_s0 + $0x8] sm:$0xff]  ;;  %1201 = vset.pattern.permute.xlu0 %v1339_v8  ;;  %1202 = vset.pattern.permute.xlu1 %v1339_v8  ;;  %v370_v10 = vld [vmem:[%s1462_s9 + $0x10] sm:$0xff]  ;;  %vm883_vm4 = vcmask 1040384   ;;  %vm885_vm5 = vcmask 1041408  }
  0x3b   : > { %v1110_v6 = vld [vmem:[%s1740_s0] sm:$0xff]  ;;  %v375_v9 = vpack.c.bf16 %v372_v5, %v369_v3  ;;  %v373_v11 = vld [vmem:[%s1462_s9 + $0x28] sm:$0xff]  ;;  %v1074_v12 = vld [vmem:[%s1462_s9 + $0x30] sm:$0xff] }
  0x3c   : > { %421 = vmatpush.bf16.msra.mxu0 %v374_v4  ;;  %1112 = vmatpush.bf16.msra.mxu2 %v374_v4  ;;  %v376_v13 = vpack.c.bf16 %v373_v11, %v370_v10  ;;  %v1077_v14 = vld [vmem:[%s1462_s9 + $0x48] sm:$0xff]  ;;  %v1075_v15 = vld [vmem:[%s1462_s9 + $0x38] sm:$0xff]  ;;  %v1078_v16 = vld [vmem:[%s1462_s9 + $0x50] sm:$0xff] }
  0x3d   : > { %440 = vmatpush.bf16.msra.mxu1 %v375_v9  ;;  %1113 = vmatpush.bf16.msra.mxu3 %v375_v9  ;;  %v634_v17 = vpack.c.bf16 %v1077_v14, %v1074_v12  ;;  %v635_v18 = vpack.c.bf16 %v1078_v16, %v1075_v15  ;;  %v1076_v19 = vld [vmem:[%s1462_s9 + $0x40] sm:$0xff]  ;;  %v1079_v20 = vld [vmem:[%s1462_s9 + $0x58] sm:$0xff]  ;;  %v366_v23 = vld [vmem:[%s1741_s1 + $0x10] sm:$0xff] }
  0x3e   : > { %v364_v21 = vld [vmem:[%s1741_s1] sm:$0xff]  ;;  %v636_v22 = vpack.c.bf16 %v1079_v20, %v1076_v19  ;;  %389 = vperm.xlu1 %1202, %v366_v23   ;;  %v365_v24 = vld [vmem:[%s1741_s1 + $0x8] sm:$0xff]  ;;  %v367_v25 = vld [vmem:[%s1741_s1 + $0x18] sm:$0xff] }
  0x3f   : > { %379 = vperm.xlu0 %1201, %v364_v21   ;;  %1068 = vmatmul.msk.bf16.vlgmr.msra.gmra.mxu0 %vm407_vm0, %v1110_v6  ;;  %v471_v26 = vld [vmem:[%s1468_s6] sm:$0xff]  ;;  %v472_v27 = vld [vmem:[%s1468_s6 + $0x8] sm:$0xff]  ;;  %v474_v28 = vld [vmem:[%s1468_s6 + $0x18] sm:$0xff] }
  0x40   : > { %459 = vmatpush.bf16.msrb.mxu2 %v376_v13  ;;  %1070 = vmatmul.msk.bf16.vlgmr.msra.gmra.mxu1 %vm407_vm0, %v1110_v6  ;;  %v475_v29 = vld [vmem:[%s1468_s6 + $0x20] sm:$0xff]  ;;  %v573_v30 = vmul.f32 %v471_v26, %v471_v26  ;;  %v574_v31 = vmul.f32 %v472_v27, %v472_v27  ;;  %v576_v32 = vmul.f32 %v474_v28, %v474_v28  ;;  %v477_v34 = vld [vmem:[%s1468_s6 + $0x30] sm:$0xff]  ;;  %v478_v35 = vld [vmem:[%s1468_s6 + $0x38] sm:$0xff] }
  0x41   : > { %1069 = vmatmul.msk.bf16.vlgmr.msra.gmra.mxu2 %vm407_vm0, %v1111_v7  ;;  %1071 = vmatmul.msk.bf16.vlgmr.msra.gmra.mxu3 %vm407_vm0, %v1111_v7  ;;  %v577_v33 = vmul.f32 %v475_v29, %v475_v29  ;;  %v579_v36 = vmul.f32 %v477_v34, %v477_v34  ;;  %v580_v37 = vmul.f32 %v478_v35, %v478_v35  ;;  %v480_v40 = vld [vmem:[%s1468_s6 + $0x48] sm:$0xff]  ;;  %v481_v41 = vld [vmem:[%s1468_s6 + $0x50] sm:$0xff] }
  0x42   : > { %644 = vmatpush.bf16.msrb.mxu3 %v634_v17  ;;  %663 = vmatpush.bf16.msrb.mxu0 %v635_v18  ;;  %v585_v38 = vadd.f32 %v576_v32, %v573_v30  ;;  %v582_v43 = vmul.f32 %v480_v40, %v480_v40  ;;  %v583_v45 = vmul.f32 %v481_v41, %v481_v41 }
  0x43   : > { %682 = vmatpush.bf16.msrb.mxu1 %v636_v22  ;;  %v594_v39 = vadd.f32 %v577_v33, %v574_v31 }
  0x44   : > { %v586_v44 = vadd.f32 %v585_v38, %v579_v36 }
  0x45   : > { %v595_v46 = vadd.f32 %v594_v39, %v580_v37 }
  0x46   : > { %394 = vperm.xlu1 %1202, %v367_v25   ;;  %v587_v50 = vadd.f32 %v586_v44, %v582_v43 }
  0x47   : > { %384 = vperm.xlu0 %1201, %v365_v24   ;;  %v596_v51 = vadd.f32 %v595_v46, %v583_v45 }
  0x48   : > { %v588_v55 = vrot.slane %v587_v50, 4 }
  0x49   : > { %v597_v56 = vrot.slane %v596_v51, 4 }
  0x4a   : > { %v589_v0 = vadd.f32 %v588_v55, %v587_v50 }
  0x4b   : > { %v598_v1 = vadd.f32 %v597_v56, %v596_v51  ;;  %v1087_v51 = vld [vmem:[%s1468_s6 + $0x68] sm:$0xff]  ;;  %v1563_v56 = vld [vmem:[%s1468_s6 + $0x80] sm:$0xff] }
  0x4c   : > { %v590_v16 = vrot.slane %v589_v0, 2  ;;  %v798_v55 = vmul.f32 %v1087_v51, %v1087_v51 }
  0x4d   : > { %v599_v17 = vrot.slane %v598_v1, 2 }
  0x4e   : > { %v591_v39 = vadd.f32 %v590_v16, %v589_v0  ;;  %v1570_v0 = vld [vmem:[%s1468_s6 + $0x88] sm:$0xff] }
  0x4f   : > { %1082 = vmatmul.msk.bf16.vlgmr.msrb.gmra.mxu0 %vm407_vm0, %v1110_v6  ;;  %v600_v44 = vadd.f32 %v599_v17, %v598_v1 }
  0x50   : > { %1084 = vmatmul.msk.bf16.vlgmr.msrb.gmra.mxu1 %vm407_vm0, %v1110_v6 }
  0x51   : > { %1072 = vmatmul.msk.bf16.vlgmr.msrb.gmra.mxu2 %vm407_vm0, %v1110_v6  ;;  %1080 = vmatmul.msk.bf16.vlgmr.msrb.gmra.mxu3 %vm407_vm0, %v1110_v6 }
  0x5f   : > { %1083 = vmatmul.msk.bf16.gmra.mxu0 %vm407_vm0, %v1111_v7 }
  0x60   : > { %1085 = vmatmul.msk.bf16.gmra.mxu1 %vm407_vm0, %v1111_v7 }
  0x61   : > { %1073 = vmatmul.msk.bf16.gmra.mxu2 %vm407_vm0, %v1111_v7  ;;  %1081 = vmatmul.msk.bf16.gmra.mxu3 %vm407_vm0, %v1111_v7 }
  0xb0   : > { %v1547_v49 = vpop.permute.xlu1 %389 }
  0xb1   : > { %v1545_v42 = vpop.permute.xlu0 %379 }
  0xb8   : > { %v1557_v10 = vpop.permute.xlu1 %394 }
  0xb9   : > { %v1550_v54 = vpop.permute.xlu0 %384 }
  0xbc   : > { %v423_v47 = vpop.f32.mrf.mxu0 }
  0xbd   : > { %v442_v48 = vpop.f32.mrf.mxu1  ;;  %v424_v52 = vadd.f32 %v423_v47, %v1545_v42 }
  0xbe   : > { %v443_v58 = vadd.f32 %v442_v48, %v1545_v42 }
  0xbf   : > { %v483_v62 = vsub.f32 %v424_v52, %v471_v26  ;;  %v534_v2 = vmul.f32 %v424_v52, %v424_v52 }
  0xc0   : > { %v484_v6 = vsub.f32 %v443_v58, %v472_v27  ;;  %v535_v11 = vmul.f32 %v443_v58, %v443_v58 }
  0xc1   : > { %v495_v18 = vmul.f32 %v483_v62, %v483_v62 }
  0xc2   : > { %v496_v23 = vmul.f32 %v484_v6, %v484_v6  ;;  %v802_v6 = vmul.f32 %v1570_v0, %v1570_v0 }
  0xc4   : > { %v428_v53 = vpop.f32.mrf.mxu2  ;;  %v447_v57 = vpop.f32.mrf.mxu3 }
  0xc5   : > { %v425_v59 = vpop.f32.mrf.mxu0  ;;  %v444_v61 = vpop.f32.mrf.mxu1  ;;  %v429_v3 = vadd.f32 %v428_v53, %v1547_v49  ;;  %v448_v7 = vadd.f32 %v447_v57, %v1547_v49  ;;  %v601_v53 = vrot.slane %v600_v44, 1 }
  0xc6   : > { %v426_v60 = vadd.f32 %v425_v59, %v1550_v54  ;;  %v445_v63 = vadd.f32 %v444_v61, %v1550_v54  ;;  %v473_v61 = vld [vmem:[%s1468_s6 + $0x10] sm:$0xff] }
  0xc7   : > { %v489_v19 = vsub.f32 %v429_v3, %v477_v34  ;;  %v540_v24 = vmul.f32 %v429_v3, %v429_v3  ;;  %v490_v25 = vsub.f32 %v448_v7, %v478_v35  ;;  %v575_v3 = vmul.f32 %v473_v61, %v473_v61 }
  0xc8   : > { %v486_v4 = vsub.f32 %v426_v60, %v474_v28  ;;  %v537_v5 = vmul.f32 %v426_v60, %v426_v60  ;;  %v487_v8 = vsub.f32 %v445_v63, %v475_v29  ;;  %v538_v9 = vmul.f32 %v445_v63, %v445_v63  ;;  %v1088_v60 = vld [vmem:[%s1468_s6 + $0x70] sm:$0xff] }
  0xc9   : > { %v541_v28 = vmul.f32 %v448_v7, %v448_v7  ;;  %v501_v38 = vmul.f32 %v489_v19, %v489_v19  ;;  %v502_v45 = vmul.f32 %v490_v25, %v490_v25  ;;  %v801_v63 = vmul.f32 %v1563_v56, %v1563_v56  ;;  %v1576_v7 = vld [vmem:[%s1468_s6 + $0x28] sm:$0xff] }
  0xca   : > { %v498_v12 = vmul.f32 %v486_v4, %v486_v4  ;;  %v546_v13 = vadd.f32 %v537_v5, %v534_v2  ;;  %v499_v14 = vmul.f32 %v487_v8, %v487_v8  ;;  %v555_v20 = vadd.f32 %v538_v9, %v535_v11  ;;  %v1086_v4 = vld [vmem:[%s1468_s6 + $0x60] sm:$0xff]  ;;  %v1579_v8 = vld [vmem:[%s1468_s6 + $0x78] sm:$0xff] }
  0xcb   : > { %v799_v2 = vmul.f32 %v1088_v60, %v1088_v60  ;;  %v797_v11 = vmul.f32 %v1086_v4, %v1086_v4 }
  0xcc   : > { %v430_v15 = vpop.f32.mrf.mxu2  ;;  %v449_v22 = vpop.f32.mrf.mxu3  ;;  %v507_v29 = vadd.f32 %v498_v12, %v495_v18  ;;  %v516_v33 = vadd.f32 %v499_v14, %v496_v23  ;;  %v547_v36 = vadd.f32 %v546_v13, %v540_v24  ;;  %v556_v43 = vadd.f32 %v555_v20, %v541_v28  ;;  %v1593_v23 = vld [vmem:[%s1468_s6 + $0xa0] sm:$0xff] }
  0xcd   : > { %v431_v21 = vadd.f32 %v430_v15, %v1557_v10  ;;  %v450_v26 = vadd.f32 %v449_v22, %v1557_v10  ;;  %v665_v27 = vpop.f32.mrf.mxu0  ;;  %v684_v32 = vpop.f32.mrf.mxu1  ;;  %v578_v12 = vmul.f32 %v1576_v7, %v1576_v7  ;;  %v800_v13 = vmul.f32 %v1579_v8, %v1579_v8  ;;  %v1093_v22 = vld [vmem:[%s1468_s6 + $0x98] sm:$0xff]  ;;  %v1598_v28 = vld [vmem:[%s1468_s6 + $0x40] sm:$0xff] }
  0xce   : > { %v517_v50 = vadd.f32 %v516_v33, %v502_v45  ;;  %v666_v9 = vadd.f32 %v665_v27, %v1545_v42  ;;  %v1588_v15 = vadd.f32 %v601_v53, %v600_v44  ;;  %v685_v16 = vadd.f32 %v684_v32, %v1545_v42  ;;  %v1096_v53 = vld [vmem:[%s1468_s6 + $0xb0] sm:$0xff] }
  0xcf   : > { %v492_v30 = vsub.f32 %v431_v21, %v480_v40  ;;  %v543_v31 = vmul.f32 %v431_v21, %v431_v21  ;;  %v493_v37 = vsub.f32 %v450_v26, %v481_v41  ;;  %v544_v34 = vmul.f32 %v450_v26, %v450_v26 }
  0xd0   : > { %v508_v40 = vadd.f32 %v507_v29, %v501_v38  ;;  %v592_v41 = vrot.slane %v591_v39, 1  ;;  %v818_v21 = vadd.f32 %v801_v63, %v798_v55  ;;  %v827_v25 = vadd.f32 %v802_v6, %v799_v2  ;;  %v1617_v55 = vld [vmem:[%s1468_s6 + $0xb8] sm:$0xff] }
  0xd1   : > { %v504_v35 = vmul.f32 %v492_v30, %v492_v30  ;;  %v548_v46 = vadd.f32 %v547_v36, %v543_v31  ;;  %v505_v47 = vmul.f32 %v493_v37, %v493_v37  ;;  %v557_v48 = vadd.f32 %v556_v43, %v544_v34  ;;  %v1603_v36 = vld [vmem:[%s1468_s6 + $0x90] sm:$0xff] }
  0xd2   : > { %v1586_v14 = vadd.f32 %v592_v41, %v591_v39  ;;  %v804_v26 = vmul.f32 %v1093_v22, %v1093_v22  ;;  %v805_v27 = vmul.f32 %v1593_v23, %v1593_v23  ;;  %v708_v29 = vsub.f32 %v666_v9, %v1087_v51 }
  0xd3   : > { %v509_v57 = vadd.f32 %v508_v40, %v504_v35  ;;  %v549_v58 = vrot.slane %v548_v46, 4  ;;  %v518_v59 = vadd.f32 %v517_v50, %v505_v47  ;;  %v558_v1 = vrot.slane %v557_v48, 4 }
  0xd4   : > { %v461_v52 = vpop.f32.mrf.mxu2  ;;  %v646_v20 = vpop.f32.mrf.mxu3  ;;  %v603_v31 = vadd.f32 %v578_v12, %v575_v3  ;;  %v809_v32 = vadd.f32 %v800_v13, %v797_v11  ;;  %v581_v33 = vmul.f32 %v1598_v28, %v1598_v28  ;;  %v709_v37 = vsub.f32 %v685_v16, %v1088_v60 }
  0xd5   : > { %v667_v62 = vpop.f32.mrf.mxu0  ;;  %v686_v5 = vpop.f32.mrf.mxu1  ;;  %v510_v17 = vrot.slane %v509_v57, 4  ;;  %v550_v18 = vadd.f32 %v549_v58, %v548_v46  ;;  %v519_v19 = vrot.slane %v518_v59, 4  ;;  %v559_v24 = vadd.f32 %v558_v1, %v557_v48 }
  0xd6   : > { %v462_v34 = vadd.f32 %v461_v52, %v1545_v42  ;;  %v647_v38 = vadd.f32 %v646_v20, %v1545_v42  ;;  %v803_v39 = vmul.f32 %v1603_v36, %v1603_v36  ;;  %v668_v35 = vadd.f32 %v667_v62, %v1550_v54 }
  0xd7   : > { %v511_v43 = vadd.f32 %v510_v17, %v509_v57  ;;  %v551_v44 = vrot.slane %v550_v18, 2  ;;  %v520_v45 = vadd.f32 %v519_v19, %v518_v59  ;;  %v560_v47 = vrot.slane %v559_v24, 2 }
  0xd8   : > { %v759_v48 = vmul.f32 %v666_v9, %v666_v9  ;;  %v819_v40 = vadd.f32 %v818_v21, %v804_v26  ;;  %v1610_v50 = vadd.f32 %v827_v25, %v805_v27  ;;  %v720_v51 = vmul.f32 %v708_v29, %v708_v29 }
  0xd9   : > { %v760_v52 = vmul.f32 %v685_v16, %v685_v16  ;;  %v687_v41 = vadd.f32 %v686_v5, %v1550_v54  ;;  %v1613_v42 = vadd.f32 %v603_v31, %v581_v33  ;;  %v721_v57 = vmul.f32 %v709_v37, %v709_v37 }
  0xda   : > { %v485_v58 = vsub.f32 %v462_v34, %v473_v61  ;;  %v707_v59 = vsub.f32 %v647_v38, %v1086_v4  ;;  %v512_v63 = vrot.slane %v511_v43, 2  ;;  %v552_v1 = vadd.f32 %v551_v44, %v550_v18 }
  0xdb   : > { %v521_v2 = vrot.slane %v520_v45, 2  ;;  %v711_v3 = vsub.f32 %v668_v35, %v1563_v56  ;;  %v561_v6 = vadd.f32 %v560_v47, %v559_v24  ;;  %v1621_v9 = vadd.f32 %v809_v32, %v803_v39 }
  0xdc   : > { %v463_v30 = vpop.f32.mrf.mxu2  ;;  %v807_v5 = vmul.f32 %v1096_v53, %v1096_v53  ;;  %v808_v11 = vmul.f32 %v1617_v55, %v1617_v55  ;;  %v1625_v12 = vmul.f32 %v462_v34, %v462_v34  ;;  %v762_v13 = vmul.f32 %v668_v35, %v668_v35  ;;  %v648_v47 = vpop.f32.mrf.mxu3 }
  0xdd   : > { %v670_v46 = vpop.f32.mrf.mxu0  ;;  %v689_v62 = vpop.f32.mrf.mxu1  ;;  %v712_v61 = vsub.f32 %v687_v41, %v1570_v0  ;;  %v1628_v17 = vmul.f32 %v485_v58, %v485_v58  ;;  %v1630_v18 = vmul.f32 %v707_v59, %v707_v59  ;;  %v1632_v19 = vmul.f32 %v647_v38, %v647_v38 }
  0xde   : > { %v671_v60 = vadd.f32 %v670_v46, %v1547_v49  ;;  %v690_v56 = vadd.f32 %v689_v62, %v1547_v49  ;;  %v1635_v20 = vadd.f32 %v512_v63, %v511_v43  ;;  %v553_v21 = vrot.slane %v552_v1, 1 }
  0xdf   : > { %v522_v24 = vadd.f32 %v521_v2, %v520_v45  ;;  %v723_v25 = vmul.f32 %v711_v3, %v711_v3  ;;  %v562_v27 = vrot.slane %v561_v6, 1  ;;  %v464_v29 = vadd.f32 %v463_v30, %v1550_v54 }
  0xe0   : > { %v714_v4 = vsub.f32 %v671_v60, %v1093_v22  ;;  %v765_v0 = vmul.f32 %v671_v60, %v671_v60  ;;  %v779_v31 = vadd.f32 %v762_v13, %v759_v48  ;;  %v724_v32 = vmul.f32 %v712_v61, %v712_v61 }
  0xe1   : > { %v763_v33 = vmul.f32 %v687_v41, %v687_v41  ;;  %v715_v34 = vsub.f32 %v690_v56, %v1593_v23  ;;  %v514_v44 = vrot.slane %v1635_v20, 1  ;;  %v1642_v45 = vadd.f32 %v553_v21, %v552_v1 }
  0xe2   : > { %v726_v37 = vmul.f32 %v714_v4, %v714_v4  ;;  %v740_v35 = vadd.f32 %v723_v25, %v720_v51  ;;  %v820_v46 = vadd.f32 %v819_v40, %v807_v5  ;;  %v488_v30 = vsub.f32 %v464_v29, %v1576_v7 }
  0xe3   : > { %v780_v58 = vadd.f32 %v779_v31, %v765_v0  ;;  %v766_v48 = vmul.f32 %v690_v56, %v690_v56  ;;  %v523_v60 = vrot.slane %v522_v24, 1  ;;  %v1645_v62 = vadd.f32 %v562_v27, %v561_v6  ;;  %v482_v56 = vld [vmem:[%s1468_s6 + $0x58] sm:$0xff] }
  0xe4   : > { %v466_v16 = vpop.f32.mrf.mxu2  ;;  %v749_v23 = vadd.f32 %v724_v32, %v721_v57  ;;  %v741_v63 = vadd.f32 %v740_v35, %v726_v37  ;;  %v727_v2 = vmul.f32 %v715_v34, %v715_v34  ;;  %v649_v40 = vadd.f32 %v648_v47, %v1550_v54 }
  0xe5   : > { %v672_v26 = vpop.f32.mrf.mxu0  ;;  %v467_v38 = vadd.f32 %v466_v16, %v1547_v49  ;;  %v691_v41 = vpop.f32.mrf.mxu1  ;;  %v821_v7 = vrot.slane %v820_v46, 4  ;;  %v829_v13 = vadd.f32 %v1610_v50, %v808_v11  ;;  %v500_v61 = vmul.f32 %v488_v30, %v488_v30 }
  0xe6   : > { %v673_v22 = vadd.f32 %v672_v26, %v1557_v10  ;;  %v692_v5 = vadd.f32 %v691_v41, %v1557_v10  ;;  %v539_v4 = vmul.f32 %v464_v29, %v464_v29  ;;  %v750_v25 = vadd.f32 %v749_v23, %v727_v2 }
  0xe7   : > { %v491_v1 = vsub.f32 %v467_v38, %v1598_v28  ;;  %v542_v57 = vmul.f32 %v467_v38, %v467_v38  ;;  %v830_v54 = vrot.slane %v829_v13, 4  ;;  %v822_v0 = vadd.f32 %v821_v7, %v820_v46 }
  0xe8   : > { %v717_v39 = vsub.f32 %v673_v22, %v1096_v53  ;;  %v768_v43 = vmul.f32 %v673_v22, %v673_v22  ;;  %v788_v53 = vadd.f32 %v763_v33, %v760_v52  ;;  %v718_v52 = vsub.f32 %v692_v5, %v1617_v55 }
  0xe9   : > { %v769_v21 = vmul.f32 %v692_v5, %v692_v5  ;;  %v503_v26 = vmul.f32 %v491_v1, %v491_v1  ;;  %v612_v50 = vsub.f32 %v1642_v45, %v1586_v14  ;;  %v1656_v11 = vadd.f32 %v523_v60, %v522_v24 }
  0xea   : > { %v729_v59 = vmul.f32 %v717_v39, %v717_v39  ;;  %v781_v3 = vadd.f32 %v780_v58, %v768_v43  ;;  %v789_v6 = vadd.f32 %v788_v53, %v766_v48  ;;  %v730_v22 = vmul.f32 %v718_v52, %v718_v52  ;;  %v651_v43 = vpop.f32.mrf.mxu3 }
  0xeb   : > { %v525_v29 = vadd.f32 %v500_v61, %v1628_v17  ;;  %v564_v55 = vadd.f32 %v539_v4, %v1625_v12  ;;  %v710_v37 = vsub.f32 %v649_v40, %v1579_v8  ;;  %v831_v46 = vadd.f32 %v830_v54, %v829_v13 }
  0xec   : > { %v468_v51 = vpop.f32.mrf.mxu2  ;;  %v742_v16 = vadd.f32 %v741_v63, %v729_v59  ;;  %v782_v27 = vrot.slane %v781_v3, 4  ;;  %v790_v31 = vadd.f32 %v789_v6, %v769_v21  ;;  %v751_v34 = vadd.f32 %v750_v25, %v730_v22 }
  0xed   : > { %v469_v28 = vadd.f32 %v468_v51, %v1557_v10  ;;  %v526_v39 = vadd.f32 %v525_v29, %v503_v26  ;;  %v565_v47 = vadd.f32 %v564_v55, %v542_v57  ;;  %v823_v58 = vrot.slane %v822_v0, 2 }
  0xee   : > { %v743_v33 = vrot.slane %v742_v16, 4  ;;  %v791_v38 = vrot.slane %v790_v31, 4  ;;  %v783_v35 = vadd.f32 %v782_v27, %v781_v3  ;;  %v752_v41 = vrot.slane %v751_v34, 4 }
  0xef   : > { %v494_v32 = vsub.f32 %v469_v28, %v482_v56  ;;  %v545_v59 = vmul.f32 %v469_v28, %v469_v28  ;;  %v584_v17 = vmul.f32 %v482_v56, %v482_v56  ;;  %v761_v23 = vmul.f32 %v649_v40, %v649_v40 }
  0xf0   : > { %v792_v48 = vadd.f32 %v791_v38, %v790_v31  ;;  %v744_v24 = vadd.f32 %v743_v33, %v742_v16  ;;  %v652_v12 = vadd.f32 %v651_v43, %v1547_v49  ;;  %v854_v53 = vlaneseq }
  0xf1   : > { %v506_v30 = vmul.f32 %v494_v32, %v494_v32  ;;  %v566_v8 = vadd.f32 %v565_v47, %v545_v59  ;;  %v784_v63 = vrot.slane %v783_v35, 2  ;;  %v832_v2 = vrot.slane %v831_v46, 2 }
  0xf2   : > { %v605_v3 = vadd.f32 %v1613_v42, %v584_v17  ;;  %v722_v51 = vmul.f32 %v710_v37, %v710_v37  ;;  %v824_v7 = vadd.f32 %v823_v58, %v822_v0  ;;  %v793_v5 = vrot.slane %v792_v48, 2  ;;  %v653_v37 = vpop.f32.mrf.mxu3 }
  0xf3   : > { %v527_v60 = vadd.f32 %v526_v39, %v506_v30  ;;  %v567_v13 = vrot.slane %v566_v8, 4  ;;  %v745_v61 = vrot.slane %v744_v24, 2  ;;  %v753_v4 = vadd.f32 %v752_v41, %v751_v34 }
  0xf4   : > { %v606_v16 = vrot.slane %v605_v3, 4  ;;  %v613_v40 = vsub.f32 %v1645_v62, %v1588_v15  ;;  %v713_v49 = vsub.f32 %v652_v12, %v1603_v36  ;;  %v764_v56 = vmul.f32 %v652_v12, %v652_v12 }
  0xf5   : > { %v528_v1 = vrot.slane %v527_v60, 4  ;;  %v568_v57 = vadd.f32 %v567_v13, %v566_v8  ;;  %v785_v52 = vadd.f32 %v784_v63, %v783_v35  ;;  %v1668_v21 = vand.u32 127, %v854_v53 }
  0xf6   : > { %v833_v42 = vadd.f32 %v832_v2, %v831_v46  ;;  %v607_v28 = vadd.f32 %v606_v16, %v605_v3  ;;  %v770_v25 = vadd.f32 %v761_v23, %v1632_v19  ;;  %v794_v26 = vadd.f32 %v793_v5, %v792_v48  ;;  %v1095_v19 = vld [vmem:[%s1468_s6 + $0xa8] sm:$0xff] }
  0xf7   : > { %v529_v6 = vadd.f32 %v528_v1, %v527_v60  ;;  %v569_v54 = vrot.slane %v568_v57, 2  ;;  %v731_v0 = vadd.f32 %v722_v51, %v1630_v18  ;;  %v746_v22 = vadd.f32 %v745_v61, %v744_v24 }
  0xf8   : > { %v825_v31 = vrot.slane %v824_v7, 1  ;;  %v754_v36 = vrot.slane %v753_v4, 2  ;;  %v725_v32 = vmul.f32 %v713_v49, %v713_v49  ;;  %v771_v29 = vadd.f32 %v770_v25, %v764_v56 }
  0xf9   : > { %v530_v27 = vrot.slane %v529_v6, 2  ;;  %v570_v33 = vadd.f32 %v569_v54, %v568_v57  ;;  %v608_v55 = vrot.slane %v607_v28, 2  ;;  %v786_v34 = vrot.slane %v785_v52, 1 }
  0xfa   : > { %v856_v38 = vadd.s32 128, %v1668_v21  ;;  %v858_v39 = vstv %s853_s11  ;;  %v834_v43 = vrot.slane %v833_v42, 1  ;;  %v795_v35 = vrot.slane %v794_v26, 1 }
  0xfb   : > { %v531_v46 = vadd.f32 %v530_v27, %v529_v6  ;;  %v571_v30 = vrot.slane %v570_v33, 1  ;;  %v609_v47 = vadd.f32 %v608_v55, %v607_v28  ;;  %v747_v58 = vrot.slane %v746_v22, 1 }
  0xfc   : > { %v826_v18 = vadd.f32 %v825_v31, %v824_v7  ;;  %v755_v48 = vadd.f32 %v754_v36, %v753_v4  ;;  %v654_v59 = vadd.f32 %v653_v37, %v1557_v10  ;;  %v857_v60 = vadd.s32 256, %v1668_v21 }
  0xfd   : > { %v572_v24 = vadd.f32 %v571_v30, %v570_v33  ;;  %v610_v41 = vrot.slane %v609_v47, 1  ;;  %v806_v17 = vmul.f32 %v1095_v19, %v1095_v19  ;;  %v787_v23 = vadd.f32 %v786_v34, %v785_v52 }
  0xfe   : > { %v835_v12 = vadd.f32 %v834_v43, %v833_v42  ;;  %v716_v8 = vsub.f32 %v654_v59, %v1095_v19  ;;  %v767_v63 = vmul.f32 %v654_v59, %v654_v59  ;;  %v796_v2 = vadd.f32 %v795_v35, %v794_v26 }
  0xff   : > { %v532_v1 = vrot.slane %v531_v46, 1  ;;  %v611_v3 = vadd.f32 %v610_v41, %v609_v47  ;;  %v811_v51 = vadd.f32 %v1621_v9, %v806_v17  ;;  %v615_v7 = vmul.f32 0.03125, %v612_v50 }
 0x100   : > { %v732_v5 = vadd.f32 %v731_v0, %v725_v32  ;;  %v728_v10 = vmul.f32 %v716_v8, %v716_v8  ;;  %v772_v13 = vadd.f32 %v771_v29, %v767_v63  ;;  %v756_v61 = vrot.slane %v755_v48, 1 }
 0x101   : > { %v614_v4 = vsub.f32 %v572_v24, %v611_v3  ;;  %v861_v6 = vadd.s32 %v858_v39, %v857_v60  ;;  %v812_v16 = vrot.slane %v811_v51, 4  ;;  %v837_v49 = vsub.f32 %v787_v23, %v826_v18 }
 0x102   : > { %v860_v56 = vadd.s32 %v858_v39, %v856_v38  ;;  %v733_v57 = vadd.f32 %v732_v5, %v728_v10  ;;  %v773_v52 = vrot.slane %v772_v13, 4  ;;  %v748_v42 = vadd.f32 %v747_v58, %v746_v22  ;;  %v359_v22 = vld [vmem:[%s343_s16] sm:$0x7] }
 0x103   : > { %v838_v28 = vsub.f32 %v796_v2, %v835_v12  ;;  %v533_v25 = vadd.f32 %v532_v1, %v531_v46  ;;  %v813_v9 = vadd.f32 %v812_v16, %v811_v51  ;;  %v616_v14 = vmul.f32 0.03125, %v613_v40 }
 0x104   : > { %v734_v45 = vrot.slane %v733_v57, 4  ;;  %v774_v50 = vadd.f32 %v773_v52, %v772_v13  ;;  %v757_v26 = vadd.f32 %v756_v61, %v755_v48  ;;  %v617_v27 = vmul.f32 0.03125, %v614_v4 }
 0x105   : > { %vm864_vm1 = vcmp.lt.s32.totalorder %v861_v6, 1024  ;;  %v814_v54 = vrot.slane %v813_v9, 2  ;;  %v840_v0 = vmul.f32 0.03125, %v837_v49  ;;  %vm863_vm2 = vcmp.lt.s32.totalorder %v860_v56, 1024 }
 0x106   : > { %v735_v31 = vadd.f32 %v734_v45, %v733_v57  ;;  %v775_v36 = vrot.slane %v774_v50, 2  ;;  %v843_v32 = vadd.f32 %v748_v42, %v1656_v11  ;;  %v841_v29 = vmul.f32 0.03125, %v838_v28 }
 0x107   : > { %v844_v15 = vadd.f32 %v757_v26, %v533_v25  ;;  %v815_v62 = vadd.f32 %v814_v54, %v813_v9  ;;  %v1340_v40 = vmov 0.0   ;;  %v859_v34 = vadd.s32 %v858_v39, %v1668_v21  ;;  %v1102_v25 = vld [vmem:[%s1486_s7 + $0x1] ss:$4 sm:$0x7] }
 0x108   : > { %v1101_v33 = vsel %vm864_vm1, 1.0, %v1340_v40  ;;  %v736_v55 = vrot.slane %v735_v31, 2  ;;  %v776_v37 = vadd.f32 %v775_v36, %v774_v50  ;;  %v622_v38 = vmul.f32 %v616_v14, %v616_v14 }
 0x109   : > { %v1100_v43 = vsel %vm863_vm2, 1.0, %v1340_v40  ;;  %v623_v19 = vmul.f32 %v617_v27, %v617_v27  ;;  %v816_v35 = vrot.slane %v815_v62, 1  ;;  %v846_v46 = vmul.f32 %v840_v0, %v840_v0  ;;  %v1104_v27 = vld [vmem:[%s1486_s7 + $0x2] ss:$4 sm:$0x7] }
 0x10a   : > { %v898_v30 = vperm.slane %v359_v22, 1  ;;  %v737_v47 = vadd.f32 %v736_v55, %v735_v31  ;;  %v777_v58 = vrot.slane %v776_v37, 1  ;;  %v847_v18 = vmul.f32 %v841_v29, %v841_v29 }
 0x10b   : > { %v873_v48 = vmul.f32 %v1101_v33, %v844_v15  ;;  %v899_v11 = vperm.slane %v359_v22, 2  ;;  %v817_v59 = vadd.f32 %v816_v35, %v815_v62  ;;  %v872_v24 = vmul.f32 %v1100_v43, %v843_v32 }
 0x10c   : > { %v738_v41 = vrot.slane %v737_v47, 1  ;;  %v778_v60 = vadd.f32 %v777_v58, %v776_v37  ;;  %vm862_vm3 = vcmp.lt.s32.totalorder %v859_v34, 1024  ;;  %v850_v17 = vadd.f32 %v847_v18, %v623_v19 }
 0x10d   : > { %v515_v21 = vadd.f32 %v514_v44, %v1635_v20  ;;  %v849_v39 = vadd.f32 %v846_v46, %v622_v38  ;;  %v621_v8 = vmul.f32 %v615_v7, %v615_v7  ;;  %v905_v63 = vmul.f32 %v899_v11, %v873_v48  ;;  %v877_v44 = vld [vmem:[%s1486_s7] ss:$4 sm:$0x7] }
 0x10e   : > { %v739_v23 = vadd.f32 %v738_v41, %v737_v47  ;;  %v836_v12 = vsub.f32 %v778_v60, %v817_v59  ;;  %v1099_v2 = vsel %vm862_vm3, 1.0, %v1340_v40  ;;  %v904_v1 = vmul.f32 %v898_v30, %v872_v24 }
 0x10f   : > { %v897_v5 = vperm.slane %v359_v22, 0  ;;  %v881_v10 = vrot.slane %v872_v24, 7  ;;  %v876_v13 = vmul.f32 %v1101_v33, %v850_v17  ;;  %v882_v61 = vrot.slane %v873_v48, 6 }
 0x110   : > { %v839_v3 = vmul.f32 0.03125, %v836_v12  ;;  %v842_v51 = vadd.f32 %v739_v23, %v515_v21  ;;  %v875_v4 = vmul.f32 %v1100_v43, %v849_v39  ;;  %v910_v20 = vrot.slane %v905_v63, 6 }
 0x111   : > { %v909_v7 = vrot.slane %v904_v1, 7  ;;  %vm1696_vm6 = vcmp.lt.s32.totalorder %v854_v53, 384  ;;  %v922_v42 = vrot.slane %v876_v13, 6 }
 0x112   : > { %v845_v6 = vmul.f32 %v839_v3, %v839_v3  ;;  %v871_v16 = vmul.f32 %v1099_v2, %v842_v51  ;;  %v921_v9 = vrot.slane %v875_v4, 7 }
 0x114   : > { %v848_v49 = vadd.f32 %v845_v6, %v621_v8  ;;  %v884_v56 = vsel %vm883_vm4, %v871_v16, %v881_v10  ;;  %v903_v57 = vmul.f32 %v897_v5, %v871_v16 }
 0x115   : > { %v886_v28 = vsel %vm885_vm5, %v884_v56, %v882_v61 }
 0x116   : > { %v874_v14 = vmul.f32 %v1099_v2, %v848_v49  ;;  %v888_v45 = vadd.f32 %v886_v28, %v877_v44  ;;  %v911_v50 = vsel %vm883_vm4, %v903_v57, %v909_v7 }
 0x117   : > { %v912_v26 = vsel %vm885_vm5, %v911_v50, %v910_v20 }
 0x118   : > { %893 = vst.msk [vmem:[%s1486_s7] ss:$4 sm:$0x7] %vm1696_vm6, %v888_v45  ;;  %v914_v53 = vadd.f32 %v1102_v25, %v912_v26  ;;  %v923_v54 = vsel %vm883_vm4, %v874_v14, %v921_v9 }
 0x119   : > { %v924_v0 = vsel %vm885_vm5, %v923_v54, %v922_v42 }
 0x11a   : > { %1103 = vst.msk [vmem:[%s1486_s7 + $0x1] ss:$4 sm:$0x7] %vm1696_vm6, %v914_v53  ;;  %v926_v31 = vadd.f32 %v1104_v27, %v924_v0 }
 0x11c   : > { %1105 = vst.msk [vmem:[%s1486_s7 + $0x2] ss:$4 sm:$0x7] %vm1696_vm6, %v926_v31 }
 0x11d PF: > { %s21_s25 = sadd.s32 1, %s1333_s25   ;;  %s1758_s22 = sld [smem:[#allocation8_spill]] }
 0x11e   : > { %p18_p3 = scmp.ge.s32.totalorder %s21_s25, 6   ;;  %s1759_s28 = sld [smem:[#allocation9_spill]] }
 0x11f   : > { %s1760_s24 = sld [smem:[#allocation10_spill]]  ;;  %s1761_s18 = smov %s1309_s19 }
 0x120   : > { %s1762_s19 = smov %s1313_s20  ;;  %s1763_s20 = smov %s1443_s14 }
 0x121   : > { %s1764_s21 = smov %s1325_s23  ;;  %20 = sbr.rel (!%p18_p3) target bundleno = 9 (0x9), region = 104 }
 0x124   : > { %s1765_s23 = smov %s1759_s28 }
 0x126   :  { %949 = vsyncpa [#allocation3], 1 }
 0x127   :  { %951 = vsyncpa [#allocation3 + $0x1], 1 }
 0x128   :  { %952 = vsyncpa [#allocation5], 1 }
 0x129   :  { %954 = vsyncpa [#allocation5 + $0x1], 1 }

</bundles_post_ra>
